<compile_context>
chip_gen: v5e
topology: v5e:2x2
jax: 0.10.0
libtpu: 0.0.40
codegen_flags: <defaults>
</compile_context>

<pallas_src>
import numpy as np
import jax
import jax.numpy as jnp
from jax.experimental import pallas as pl
from jax.experimental.pallas import tpu as pltpu


def _penc_kernel(row_ref, scat_ref, colf_ref, o_ref):
    """Assemble one (tile_x, tile_y*C) lane-dense block of the 2D encoding.

    row_ref  : (tile_x, C)        x-dependent channel values (emb_x; zero on y-channels)
    scat_ref : (C, tile_y*C)      one-hot replication matrix  S[c, y*C + c] = 1
    colf_ref : (1, tile_y*C)      y-dependent channel values, flattened (emb_y; zero on x-channels)
    o_ref    : (tile_x, tile_y*C) output block (batch dim squeezed away)

        out[b, x, y*C + c] = emb_x_part[x, c] + emb_y_part[y, c]   (same for every b)

    No transcendentals run here; the only block-sized temporary is the matmul
    result, so VMEM/vreg pressure stays minimal and the store slot is the
    binding resource.
    """
    rep = jnp.dot(row_ref[...], scat_ref[...], preferred_element_type=jnp.float32)
    o_ref[...] = (rep + colf_ref[...]).astype(o_ref.dtype)


def positional_encoding_2d(tensor, *, tile_x=None, tile_y=None):
    """JAX/Pallas equivalent of PositionalEncoding2D.forward."""
    if tensor.ndim != 4:
        raise RuntimeError("The input tensor has to be 4d!")
    B, X, Y, org_ch = tensor.shape
    C = org_ch

    # ---- tiny host-side sin/cos tables: (X + Y) * channels/2 transcendentals ----
    channels = int(np.ceil(org_ch / 4) * 2)
    inv_freq = 1.0 / (10000.0 ** (np.arange(0, channels, 2, dtype=np.float32) / channels))
    sin_x = np.arange(X, dtype=np.float32)[:, None] * inv_freq[None, :]
    sin_y = np.arange(Y, dtype=np.float32)[:, None] * inv_freq[None, :]
    emb_x = np.stack([np.sin(sin_x), np.cos(sin_x)], axis=-1).reshape(X, channels)
    emb_y = np.stack([np.sin(sin_y), np.cos(sin_y)], axis=-1).reshape(Y, channels)

    # x-dependent part of the org_ch output channels (zeros on the y-channel slots)
    row_tab = np.zeros((X, C), np.float32)
    nx = min(C, channels)
    row_tab[:, :nx] = emb_x[:, :nx]
    # y-dependent part (zeros on the x-channel slots), flattened lane-dense later
    col_tab = np.zeros((Y, C), np.float32)
    if C > channels:
        col_tab[:, channels:] = emb_y[:, : C - channels]

    # ---- tile selection (lane-dense output blocks, VMEM-friendly on v7x) ----
    YC = Y * C
    if tile_y is None:
        MAX_LANE = 4096                               # lanes per output block
        if YC <= MAX_LANE:
            tile_y = Y
        else:
            g = int(np.lcm(C, 128) // C)              # min rows giving a 128-multiple lane block
            tile_y = (MAX_LANE // C // g) * g
            if tile_y <= 0 or tile_y >= Y:
                tile_y = Y
    lane = tile_y * C
    if tile_x is None:
        MAX_BLOCK_ELEMS = (2 * 1024 * 1024) // 4      # ~2 MiB f32 output block
        max_rows = max(8, MAX_BLOCK_ELEMS // lane)
        tile_x = X if X <= max_rows else max(8, (max_rows // 8) * 8)

    # one-hot replication matrix: S[c, y_local*C + c] = 1 (identical for every Y tile)
    scat = np.zeros((C, lane), np.float32)
    for c in range(C):
        scat[c, c::C] = 1.0

    row_tab = jnp.asarray(row_tab)
    col_flat = jnp.asarray(col_tab.reshape(1, YC))
    scat = jnp.asarray(scat)

    nxt = pl.cdiv(X, tile_x)
    nyt = pl.cdiv(Y, tile_y)

    enc_flat = pl.pallas_call(
        _penc_kernel,
        out_shape=jax.ShapeDtypeStruct((B, X, YC), tensor.dtype),
        grid_spec=pltpu.PrefetchScalarGridSpec(
            num_scalar_prefetch=0,
            grid=(B, nxt, nyt),
            in_specs=[
                pl.BlockSpec((tile_x, C), lambda b, i, j: (i, 0)),   # x table (revisited across b, j)
                pl.BlockSpec((C, lane), lambda b, i, j: (0, 0)),     # replication matrix (constant)
                pl.BlockSpec((1, lane), lambda b, i, j: (0, j)),     # flattened y table
            ],
            # batch dim squeezed out of the kernel view; each (b, i, j) writes
            # the same encoding block into its own batch slice.
            out_specs=pl.BlockSpec((None, tile_x, lane), lambda b, i, j: (b, i, j)),
        ),
        compiler_params=pltpu.CompilerParams(
            dimension_semantics=("parallel", "parallel", "parallel"),
            vmem_limit_bytes=32 * 1024 * 1024,
        ),
    )(row_tab, scat, col_flat)

    # Free reshape (same contiguous layout): (B, X, Y*C) -> (B, X, Y, C).
    # TODO(synk): the PyTorch module caches `cached_penc` across calls; a pure
    # kernel has no persistent module state, so the encoding is recomputed per call.
    return enc_flat.reshape(B, X, Y, C)


def _reference_penc(shape, dtype):
    """NumPy transliteration of the PyTorch forward (for verification)."""
    B, X, Y, org_ch = shape
    channels = int(np.ceil(org_ch / 4) * 2)
    inv_freq = 1.0 / (10000.0 ** (np.arange(0, channels, 2, dtype=np.float32) / channels))
    pos_x = np.arange(X, dtype=np.float32)
    pos_y = np.arange(Y, dtype=np.float32)
    sin_inp_x = np.einsum("i,j->ij", pos_x, inv_freq)
    sin_inp_y = np.einsum("i,j->ij", pos_y, inv_freq)

    def get_emb(s):
        e = np.stack((np.sin(s), np.cos(s)), axis=-1)
        return e.reshape(s.shape[0], -1)

    emb_x = get_emb(sin_inp_x)[:, None, :]
    emb_y = get_emb(sin_inp_y)
    emb = np.zeros((X, Y, channels * 2), dtype=np.float32)
    emb[:, :, :channels] = emb_x
    emb[:, :, channels:2 * channels] = emb_y
    out = np.broadcast_to(emb[None, :, :, :org_ch], (B, X, Y, org_ch))
    return out.astype(dtype)


if __name__ == "__main__":
    key = jax.random.PRNGKey(0)

    # (batch, x, y, ch) -- small deterministic example
    x = jax.random.normal(key, (2, 16, 16, 8), dtype=jnp.float32)
    out = jax.block_until_ready(positional_encoding_2d(x))
    ref = _reference_penc(x.shape, np.float32)
    np.testing.assert_allclose(np.asarray(out), ref, rtol=1e-5, atol=1e-5)

    # exercise the multi-tile grid path (explicit small X tile -> grid (2, 2, 1))
    out2 = jax.block_until_ready(positional_encoding_2d(x, tile_x=8))
    np.testing.assert_allclose(np.asarray(out2), ref, rtol=1e-5, atol=1e-5)

    # odd channel count / non-128-multiple lane width (full-extent last dim)
    x3 = jax.random.normal(key, (1, 12, 10, 6), dtype=jnp.float32)
    out3 = jax.block_until_ready(positional_encoding_2d(x3))
    ref3 = _reference_penc(x3.shape, np.float32)
    np.testing.assert_allclose(np.asarray(out3), ref3, rtol=1e-5, atol=1e-5)

    print("KERNEL_OK")
</pallas_src>

<mosaic_0001>
module attributes {stable_mosaic.version = 11 : i64} {
  func.func @_penc_kernel(%arg0: i32, %arg1: i32, %arg2: i32, %arg3: memref<16x8xf32, #tpu.memory_space<vmem>>, %arg4: memref<8x128xf32, #tpu.memory_space<vmem>>, %arg5: memref<1x128xf32, #tpu.memory_space<vmem>>, %arg6: memref<1x16x128xf32, #tpu.memory_space<vmem>>) attributes {dimension_semantics = [#tpu.dimension_semantics<parallel>, #tpu.dimension_semantics<parallel>, #tpu.dimension_semantics<parallel>], iteration_bounds = array<i64: 2, 1, 1>, scalar_prefetch = 0 : i64, scratch_operands = 0 : i64, tpu.core_type = #tpu.core_type<tc>, window_params = [{transform_indices = @transform_0, window_bounds = array<i64: 16, 8>}, {pipeline_mode = #tpu.pipeline_mode<synchronous>, transform_indices = @transform_1, window_bounds = array<i64: 8, 128>}, {transform_indices = @transform_2, window_bounds = array<i64: 1, 128>}, {transform_indices = @transform_3, window_bounds = array<i64: 1, 16, 128>}]} {
    %c0 = arith.constant 0 : index
    %c0_0 = arith.constant 0 : index
    %0 = vector.load %arg3[%c0, %c0_0] : memref<16x8xf32, #tpu.memory_space<vmem>>, vector<16x8xf32>
    %c0_1 = arith.constant 0 : index
    %c0_2 = arith.constant 0 : index
    %1 = vector.load %arg4[%c0_1, %c0_2] : memref<8x128xf32, #tpu.memory_space<vmem>>, vector<8x128xf32>
    %cst = arith.constant dense<0.000000e+00> : vector<16x128xf32>
    %2 = tpu.matmul %0, %1, %cst {dimension_numbers = #tpu.dot_dimension_numbers<[1], [0], [0], [1], [0, 0, 1, 1], [], []>} : vector<16x8xf32>, vector<8x128xf32>, vector<16x128xf32> -> vector<16x128xf32>
    %c0_3 = arith.constant 0 : index
    %c0_4 = arith.constant 0 : index
    %3 = vector.load %arg5[%c0_3, %c0_4] : memref<1x128xf32, #tpu.memory_space<vmem>>, vector<1x128xf32>
    %4 = vector.broadcast %3 : vector<1x128xf32> to vector<16x128xf32>
    %5 = arith.addf %2, %4 : vector<16x128xf32>
    %c0_5 = arith.constant 0 : index
    %c0_6 = arith.constant 0 : index
    %c0_7 = arith.constant 0 : index
    %6 = vector.load %arg6[%c0_5, %c0_6, %c0_7] : memref<1x16x128xf32, #tpu.memory_space<vmem>>, vector<1x16x128xf32>
    %7 = vector.shape_cast %6 : vector<1x16x128xf32> to vector<16x128xf32>
    %8 = vector.shape_cast %5 : vector<16x128xf32> to vector<1x16x128xf32>
    tpu.vector_store %arg6[%c0_5, %c0_6, %c0_7], %8 {strides = array<i32>} : memref<1x16x128xf32, #tpu.memory_space<vmem>>, vector<1x16x128xf32>,
    return
  }
  func.func @transform_0(%arg0: i32, %arg1: i32, %arg2: i32) -> (i32, i32) {
    %c0_i32 = arith.constant 0 : i32
    %c0_i32_0 = arith.constant 0 : i32
    return %arg1, %c0_i32 : i32, i32
  }
  func.func @transform_1(%arg0: i32, %arg1: i32, %arg2: i32) -> (i32, i32) {
    %c0_i32 = arith.constant 0 : i32
    %c0_i32_0 = arith.constant 0 : i32
    %c0_i32_1 = arith.constant 0 : i32
    return %c0_i32, %c0_i32_0 : i32, i32
  }
  func.func @transform_2(%arg0: i32, %arg1: i32, %arg2: i32) -> (i32, i32) {
    %c0_i32 = arith.constant 0 : i32
    %c0_i32_0 = arith.constant 0 : i32
    return %c0_i32, %arg2 : i32, i32
  }
  func.func @transform_3(%arg0: i32, %arg1: i32, %arg2: i32) -> (i32, i32, i32) {
    %c0_i32 = arith.constant 0 : i32
    return %arg0, %arg1, %arg2 : i32, i32, i32
  }
}

</mosaic_0001>

<bundles_post_ra>
// kernel: tpu_custom_call.1
= control target key start
LH: loop header
LB: loop body
LE: loop exit
PB: predicated region body
PF: predicated region fallthrough
CT: control target
= control target key end

     0   :  { %8 = vsyncpa [#allocation3], 0  ;;  %s639_s0 = inlined_call_operand.vmem [shape: f32[16,8], index: 0, kind: input, shape index: {}]   ;;  %s640_s1 = inlined_call_operand.vmem [shape: f32[8,128], index: 1, kind: input, shape index: {}]   ;;  %s641_s2 = inlined_call_operand.vmem [shape: f32[1,128], index: 2, kind: input, shape index: {}]   ;;  %s642_s3 = inlined_call_operand.hbm [shape: f32[2,16,128], index: 3, kind: output, shape index: {}]  }
   0x1   :  { %10 = vsyncpa [#allocation3 + $0x1], 0  ;;  %s535_s12 = smov 0   ;;  %s537_s13 = smov 0  }
   0x2   :  { %s539_s14 = smov 0   ;;  %s541_s15 = smov 0  }
   0x3   :  { %s543_s16 = smov 0   ;;  %s545_s17 = smov 0  }
   0x4 LB: > { %s359_s18 = sadd.s32 4294967295, %s511_s17   ;;  %s360_s19 = sadd.s32 4294967294, %s511_s17   ;;  %s511_s17 = sphi %s545_s17, %s16_s17   ;;  %s507_s16 = sphi %s543_s16, %s649_s16   ;;  %s503_s15 = sphi %s541_s15, %s648_s15   ;;  %s499_s14 = sphi %s539_s14, %s647_s14   ;;  %s495_s13 = sphi %s537_s13, %s646_s13   ;;  %s491_s12 = sphi %s535_s12, %s645_s12  }
   0x5   : > { %s35_s20 = sadd.s32 1, %s507_s16  ;;  %s119_s21 = sadd.s32 1, %s499_s14 }
   0x6   : > { %p37_p0 = scmp.ge.s32.totalorder %s35_s20, 2  ;;  %p129_p1 = scmp.ne.s32.totalorder %s499_s14, %s495_s13 }
   0x7   : > { %p130_p2 = scmp.eq.s32.totalorder %s359_s18, 1  ;;  %p135_p3 = scmp.ne.s32.totalorder %s495_s13, %s491_s12 }
   0x8   : > { %s651_s20 = smov (%p37_p0, %s35_s20), 0  ;;  %p136_p5 = scmp.eq.s32.totalorder %s360_s19, 1 }
   0x9   : > { %p575_p4 = por %p130_p2, %p129_p1  ;;  %s112_s23 = ssub.s32 %s507_s16, %s651_s20 }
   0xa   : > { %p364_p6 = scmp.ge.s32.totalorder %s511_s17, 1  ;;  %p117_p7 = scmp.eq.s32.totalorder %s112_s23, 0 }
   0xb   : > { %p582_p8 = por %p136_p5, %p135_p3  ;;  %p172_p9 = scmp.lt.s32.totalorder %s511_s17, 3 }
   0xc   : > { %s588_s25 = scalar_select %p117_p7, %s499_s14, %s119_s21  }
   0xd   : > { %p173_p10 = pnand %p364_p6, %p172_p9 }
   0xe   : > { %s196_s5 = sand.u32 (!%p173_p10), 1, %s495_s13   ;;  %s373_s7 = sshll.u32 (!%p173_p10), %s503_s15, 4 }
   0xf   : > { %176 = sbr.rel (%p173_p10) target bundleno = 155 (0x9b), region = 32  ;;  %s365_s6 = sshll.u32 (!%p173_p10), %s196_s5, 4 }
  0x10   : > { %s263_s10 = scalar_lea.hbm (!%p173_p10), %s642_s3, %s373_s7  ;;  %s198_s19 = scalar_lea.vmem (!%p173_p10), [#allocation2], %s365_s6 }
  0x11   : > { %s264_s21 = sshll.u32 (!%p173_p10), %s198_s19, 4  ;;  %s266_s23 = sshll.u32 (!%p173_p10), %s263_s10, 4  ;;  %s265_s21 = int_to_ptr.vmem [resolvable:$true] %s264_s21  ;;  %s267_s23 = int_to_ptr.hbm [resolvable:$true] %s266_s23 }
  0x12   : > { %s249_s15 = scalar_lea.sflag (!%p173_p10), [#allocation3], %s196_s5  ;;  %s447_s26 = sshra.s32 (!%p173_p10), %s267_s23, 4  ;;  %s448_s26 = int_to_ptr.hbm [resolvable:$true] %s447_s26 }
  0x13   : > { %s449_s27 = scalar_lea.hbm (!%p173_p10), %s448_s26, 16  ;;  %s453_s30 = scalar_lea.hbm (!%p173_p10), %s642_s3, 32 }
  0x14   : > { %v211_v0 = vld [vmem:[%s640_s1] sm:$0xff]  ;;  %vm216_vm0 = vcmask 64512   ;;  %v210_v2 = vld [vmem:[%s639_s0 + $0x8] sm:$0xff]  ;;  %p450_p11 = scmp.ne.s32.totalorder %s448_s26, %s449_s27  ;;  %p454_p0 = scmp.lt.s32.totalorder %s448_s26, %s642_s3 }
  0x15   : > { %v209_v1 = vld [vmem:[%s639_s0] sm:$0xff]  ;;  %238 = vmatpush.msra.mxu0 %v211_v0  ;;  %374 = vmatpush.msra.mxu1 %v211_v0  ;;  %p455_p1 = scmp.lt.s32.totalorder %s453_s30, %s449_s27 }
  0x16   : > { %366 = vmatmul.msk.f32.vlgmr.msra.gmra.mxu0 %vm216_vm0, %v209_v1  ;;  %367 = vmatmul.msk.f32.vlgmr.msra.gmra.mxu1 %vm216_vm0, %v210_v2  ;;  %v432_v3 = vld [vmem:[%s641_s2] ss:$0 sm:$0xff]  ;;  %p451_p12 = pnand %p450_p11, %p575_p4 }
  0x17   : > { %p456_p2 = por %p455_p1, %p454_p0 }
  0x18   : > { %p452_p13 = pneg %p451_p12 }
  0x1a   : > { %p457_p3 = pnand %p456_p2, %p452_p13 }
  0x93   : > { %v240_v4 = vpop.f32.mrf.mxu0  ;;  %v243_v5 = vpop.f32.mrf.mxu1 }
  0x94   : > { %v241_v6 = vadd.f32 %v432_v3, %v240_v4  ;;  %v244_v7 = vadd.f32 %v432_v3, %v243_v5 }
  0x96   : > { %246 = vst [vmem:[%s198_s19] sm:$0xff] %v241_v6 }
  0x97   : > { %247 = vst [vmem:[%s198_s19 + $0x8] sm:$0xff] %v244_v7 }
  0x98   : > { %460 = shalt.err (!%p457_p3)
}
  0x99   : > { %s513_s5 = smov 128   ;;  %s514_s7 = smov 8  }
  0x9a   : > { %375 = dma.vmem_to_hbm [thread:$0]  (%p575_p4), %s265_s21, 256, %s267_s23, %s249_s15, %s513_s5, %s513_s5, %s514_s7  }
  0x9b PF: > { %p381_p5 = scmp.ge.s32.totalorder %s511_s17, 2  ;;  %s281_s8 = sand.u32 1, %s491_s12  }
  0x9c   : > { %s282_s9 = scalar_lea.sflag [#allocation3], %s281_s8 }
  0x9d   : > { %p378_p6 = pnand %p381_p5, %p582_p8 }
  0x9f   : > { %p379_p7 = pneg %p378_p6 }
  0xa1   : > { %486 = dma.done.wait (%p379_p7), %s282_s9, 256  }
  0xa2   : > { %488 = vsyncadd (%p379_p7), %s282_s9, 4294967040  ;;  %s16_s17 = sadd.s32 1, %s511_s17   ;;  %s645_s12 = smov %s495_s13 }
  0xa3   : > { %p13_p9 = scmp.ge.s32.totalorder %s16_s17, 4   ;;  %s646_s13 = smov %s499_s14 }
  0xa4   : > { %s647_s14 = smov %s588_s25  ;;  %s648_s15 = smov %s507_s16 }
  0xa5   : > { %s649_s16 = smov %s651_s20  ;;  %15 = sbr.rel (!%p13_p9) target bundleno = 4 (0x4), region = 70 }
  0xaa   :  { %288 = vsyncpa [#allocation3], 1 }
  0xab   :  { %290 = vsyncpa [#allocation3 + $0x1], 1 }

</bundles_post_ra>
